<compile_context>
chip_gen: v7x
topology: tpu7x:2x2x1
jax: 0.10.0
libtpu: 0.0.40
codegen_flags: <defaults>
</compile_context>

<pallas_src>
import functools

import jax
import jax.numpy as jnp
from jax.experimental import pallas as pl
from jax.experimental.pallas import tpu as pltpu


_MiB = 1024 * 1024

# Two-pass HW-tile target: 8 MiB keeps per-grid-step fixed overhead (<~0.35 us)
# below ~10% even at v7x's ~3.2 TB/s HBM; double-buffered in+out in pass 2 is
# ~32 MiB, still inside v7x's 64 MiB VMEM.
_TWO_PASS_TARGET_BLOCK_BYTES = 8 * _MiB

# Single-buffer (pipeline_mode=Buffered(1)) the constant weight/bias only when
# the reclaimed VMEM is meaningful.
_SINGLE_BUFFER_MIN_BYTES = 512 * 1024

# Use the MXU matvec for the 1x1 conv at large C (avoids a spilling (C,C) f32
# VPU intermediate); keep the VPU path for small C.
_MXU_MIN_CHANNELS = 256


# ---------------------------------------------------------------------------
# Generation-aware VMEM budgeting
# ---------------------------------------------------------------------------
@functools.lru_cache(maxsize=1)
def _vmem_capacity_bytes():
    try:
        info = pltpu.get_tpu_info()
        cap = int(getattr(info, "vmem_capacity_bytes", 0) or 0)
        if cap > 0:
            return cap
    except Exception:
        pass
    return 64 * _MiB  # conservative fallback (v7x-sized)


def _fused_vmem_budget():
    # ~44 MiB on v7x (64 MiB VMEM), ~108 MiB on v5e/v6e (128 MiB VMEM).
    return max(32 * _MiB, _vmem_capacity_bytes() - 20 * _MiB)


def _vmem_limit_cap():
    # Leave headroom for compiler-internal scratch: ~54 MiB on v7x, ~118 MiB on v5e/v6e.
    return max(40 * _MiB, _vmem_capacity_bytes() - 10 * _MiB)


def _vmem_limit(*buffer_bytes):
    need = int(sum(buffer_bytes)) + 4 * _MiB  # headroom for compiler scratch
    return int(min(max(32 * _MiB, need), _vmem_limit_cap()))


def _padded_bytes(rows, cols, itemsize):
    """VMEM footprint of a 2D (rows, cols) buffer: minor dim pads to 128 lanes,
    second-minor pads to the sublane tile (8 sublanes of 32-bit packing)."""
    sub = (8 * 4) // itemsize          # 8 for f32, 16 for bf16, 32 for int8
    r = pl.cdiv(int(rows), sub) * sub
    c = pl.cdiv(int(cols), 128) * 128
    return int(r * c * itemsize)


def _n_buffers(padded_bytes):
    return 1 if padded_bytes >= _SINGLE_BUFFER_MIN_BYTES else 2


def _const_spec(shape, index_map, padded_bytes):
    """BlockSpec for an operand whose block never changes across the grid."""
    if _n_buffers(padded_bytes) == 1:
        return pl.BlockSpec(shape, index_map, pipeline_mode=pl.Buffered(1))
    return pl.BlockSpec(shape, index_map)


# ---------------------------------------------------------------------------
# Kernels
# ---------------------------------------------------------------------------
def _gate_from_pooled(w_ref, b_ref, pooled, *, use_mxu):
    """sigmoid(W @ pooled + b) in f32; pooled and result are (C, 1)."""
    bias = b_ref[...].astype(jnp.float32)
    if use_mxu:
        # MXU matvec: no (C,C) f32 intermediate, no per-step weight upcast,
        # no pooled.T cross-lane transpose. Weights stay in their own dtype.
        y = jnp.dot(w_ref[...], pooled.astype(w_ref.dtype),
                    preferred_element_type=jnp.float32,
                    precision=jax.lax.Precision.HIGHEST)
    else:
        # Small C: VPU mul + row-reduce (an N=1 MXU push is wasteful here).
        w = w_ref[...].astype(jnp.float32)
        y = jnp.sum(w * pooled.T, axis=1, keepdims=True)
    return jax.nn.sigmoid(y + bias)


def _ca_fused_kernel(x_ref, w_ref, b_ref, o_ref, *, use_mxu):
    # x_ref: (1, C, HW); w_ref: (C, C); b_ref: (C, 1); o_ref: (1, C, HW)
    x = x_ref[0]                                                     # (C, HW)
    # AdaptiveAvgPool2d(1): f32 accumulation only, no full-tile upcast.
    pooled = jnp.mean(x, axis=-1, keepdims=True, dtype=jnp.float32)  # (C, 1)
    attn = _gate_from_pooled(w_ref, b_ref, pooled, use_mxu=use_mxu)  # (C, 1) f32
    # Multiply in the input dtype (a full-tile f32 upcast would double VMEM/vreg
    # pressure); bf16 gate rounding is within bf16 noise of the f32 reference.
    o_ref[0] = x * attn.astype(x.dtype)


def _ca_gate_kernel(x_ref, w_ref, b_ref, g_ref, acc_ref, *,
                    total_hw, hw_tile, use_mxu):
    # Pass 1 of the two-pass path: HW-tiled pooled-sum + gate on the last tile.
    # x_ref: (1, C, hw_tile); w_ref: (C, C); b_ref: (C, 1); g_ref: (1, C, 1) f32
    hw_i = pl.program_id(1)
    last = pl.num_programs(1) - 1

    @pl.when(hw_i == 0)
    def _init():
        acc_ref[...] = jnp.zeros_like(acc_ref)

    if total_hw % hw_tile != 0:
        # Only the final tile can be ragged: interior tiles stay mask-free.
        @pl.when(hw_i < last)
        def _interior():
            acc_ref[...] += jnp.sum(x_ref[0], axis=-1, keepdims=True,
                                    dtype=jnp.float32)

        @pl.when(hw_i == last)
        def _ragged_last():
            x = x_ref[0]
            lane = jax.lax.broadcasted_iota(jnp.int32, x.shape, 1)
            valid = (hw_i * hw_tile + lane) < total_hw
            x = jnp.where(valid, x, jnp.zeros_like(x))
            acc_ref[...] += jnp.sum(x, axis=-1, keepdims=True, dtype=jnp.float32)
    else:
        acc_ref[...] += jnp.sum(x_ref[0], axis=-1, keepdims=True,
                                dtype=jnp.float32)

    @pl.when(hw_i == last)
    def _finalize():
        pooled = acc_ref[...] * jnp.float32(1.0 / total_hw)          # (C, 1)
        g_ref[0] = _gate_from_pooled(w_ref, b_ref, pooled, use_mxu=use_mxu)


def _ca_scale_kernel(x_ref, g_ref, o_ref):
    # Pass 2 of the two-pass path: broadcast scale, multiply in input dtype.
    o_ref[0] = x_ref[0] * g_ref[0].astype(o_ref.dtype)


# ---------------------------------------------------------------------------
# Wrapper
# ---------------------------------------------------------------------------
def channel_attention(x, weight, bias, *, force_impl=None):
    """ChannelAttention forward: x * sigmoid(Conv1x1(AdaptiveAvgPool2d(x))).

    x: (B, C, H, W); weight: (C, C) (from Conv2d (C, C, 1, 1)); bias: (C,).
    """
    B, C, H, W = x.shape
    HW = H * W
    itemsize = x.dtype.itemsize

    x_flat = x.reshape(B, C, HW)
    bias_col = bias.reshape(C, 1)        # pre-shaped: no in-kernel transpose

    use_mxu = C >= _MXU_MIN_CHANNELS

    # Padded-in-VMEM sizes (the (C,1)-shaped buffers pad to (C, 128) lanes).
    blk_pad = _padded_bytes(C, HW, itemsize)
    w_pad = _padded_bytes(C, C, weight.dtype.itemsize)
    b_pad = _padded_bytes(C, 1, bias.dtype.itemsize)
    gate_pad = _padded_bytes(C, 1, 4)
    w_bufs = _n_buffers(w_pad)
    b_bufs = _n_buffers(b_pad)

    fused_need = 4 * blk_pad + w_bufs * w_pad + b_bufs * b_pad

    if force_impl == "fused":
        use_fused = True
    elif force_impl == "two_pass":
        use_fused = False
    else:
        # HBM-bandwidth-bound op: fused is 2 passes over x vs 3 for two-pass,
        # so use it whenever the blocks fit VMEM (no batch-depth gate).
        use_fused = fused_need <= _fused_vmem_budget()

    if use_fused:
        cost = pl.CostEstimate(
            flops=int(B * (2 * C * HW + 2 * C * C)),
            transcendentals=int(B * C),
            bytes_accessed=int(2 * B * C * HW * itemsize
                               + C * C * weight.dtype.itemsize
                               + C * bias.dtype.itemsize),
        )
        out_flat = pl.pallas_call(
            functools.partial(_ca_fused_kernel, use_mxu=use_mxu),
            out_shape=jax.ShapeDtypeStruct((B, C, HW), x.dtype),
            grid_spec=pltpu.PrefetchScalarGridSpec(
                num_scalar_prefetch=0,
                grid=(B,),
                in_specs=[
                    pl.BlockSpec((1, C, HW), lambda b: (b, 0, 0)),
                    _const_spec((C, C), lambda b: (0, 0), w_pad),
                    _const_spec((C, 1), lambda b: (0, 0), b_pad),
                ],
                out_specs=pl.BlockSpec((1, C, HW), lambda b: (b, 0, 0)),
            ),
            compiler_params=pltpu.CompilerParams(
                dimension_semantics=("parallel",),
                vmem_limit_bytes=_vmem_limit(fused_need),
            ),
            cost_estimate=cost,
        )(x_flat, weight, bias_col)
        return out_flat.reshape(B, C, H, W)

    # --------------------- two-pass (HW-tiled) path ---------------------
    hw_tile = max(128, (_TWO_PASS_TARGET_BLOCK_BYTES // max(1, C * itemsize)) // 128 * 128)
    hw_tile = int(min(hw_tile, pl.cdiv(HW, 128) * 128))   # lane-dense multiple of 128
    n_hw = pl.cdiv(HW, hw_tile)
    tile_pad = _padded_bytes(C, hw_tile, itemsize)

    # Pass 1: pooled mean + 1x1 conv + sigmoid -> gate (B, C, 1) f32.
    cost1 = pl.CostEstimate(
        flops=int(B * (2 * C * HW + 2 * C * C)),
        transcendentals=int(B * C),
        bytes_accessed=int(B * C * HW * itemsize + C * C * weight.dtype.itemsize
                           + C * bias.dtype.itemsize + B * C * 4),
    )
    gate = pl.pallas_call(
        functools.partial(_ca_gate_kernel, total_hw=HW, hw_tile=hw_tile,
                          use_mxu=use_mxu),
        out_shape=jax.ShapeDtypeStruct((B, C, 1), jnp.float32),
        grid_spec=pltpu.PrefetchScalarGridSpec(
            num_scalar_prefetch=0,
            grid=(B, n_hw),                 # reduction (HW) axis last
            in_specs=[
                pl.BlockSpec((1, C, hw_tile), lambda b, h: (b, 0, h)),
                _const_spec((C, C), lambda b, h: (0, 0), w_pad),
                _const_spec((C, 1), lambda b, h: (0, 0), b_pad),
            ],
            out_specs=pl.BlockSpec((1, C, 1), lambda b, h: (b, 0, 0)),
            scratch_shapes=[pltpu.VMEM((C, 1), jnp.float32)],
        ),
        compiler_params=pltpu.CompilerParams(
            dimension_semantics=("parallel", "arbitrary"),
            vmem_limit_bytes=_vmem_limit(2 * tile_pad, w_bufs * w_pad,
                                         b_bufs * b_pad, 2 * gate_pad, gate_pad),
        ),
        cost_estimate=cost1,
    )(x_flat, weight, bias_col)

    # Pass 2: broadcast scale; fully parallel grid.
    cost2 = pl.CostEstimate(
        flops=int(B * C * HW),
        transcendentals=0,
        bytes_accessed=int(2 * B * C * HW * itemsize + B * C * 4),
    )
    out_flat = pl.pallas_call(
        _ca_scale_kernel,
        out_shape=jax.ShapeDtypeStruct((B, C, HW), x.dtype),
        grid_spec=pltpu.PrefetchScalarGridSpec(
            num_scalar_prefetch=0,
            grid=(B, n_hw),
            in_specs=[
                pl.BlockSpec((1, C, hw_tile), lambda b, h: (b, 0, h)),
                pl.BlockSpec((1, C, 1), lambda b, h: (b, 0, 0)),
            ],
            out_specs=pl.BlockSpec((1, C, hw_tile), lambda b, h: (b, 0, h)),
        ),
        compiler_params=pltpu.CompilerParams(
            dimension_semantics=("parallel", "parallel"),
            vmem_limit_bytes=_vmem_limit(4 * tile_pad, 2 * gate_pad),
        ),
        cost_estimate=cost2,
    )(x_flat, gate)

    return out_flat.reshape(B, C, H, W)


# ---------------------------------------------------------------------------
# Test
# ---------------------------------------------------------------------------
def _reference(x, weight, bias):
    pooled = jnp.mean(x, axis=(2, 3))                       # (B, C)
    gate = jax.nn.sigmoid(pooled @ weight.T + bias)         # (B, C)
    return x * gate[:, :, None, None]


if __name__ == "__main__":
    key = jax.random.PRNGKey(0)
    k_x, k_w, k_b, k_x2, k_x3, k_w3, k_b3 = jax.random.split(key, 7)

    # 1) Fused single-pass path, small-C VPU gate (default policy picks fused).
    B, C, H, W = 2, 4, 16, 16
    x = jax.random.normal(k_x, (B, C, H, W), dtype=jnp.float32)
    bound = 1.0 / (C ** 0.5)                                # Conv2d(C, C, 1) init bound
    weight = jax.random.uniform(k_w, (C, C), jnp.float32, -bound, bound)
    bias = jax.random.uniform(k_b, (C,), jnp.float32, -bound, bound)

    out = jax.block_until_ready(channel_attention(x, weight, bias))
    ref = _reference(x, weight, bias)
    assert jnp.allclose(out, ref, atol=1e-5, rtol=1e-5), "fused (VPU) path mismatch vs reference"

    # 2) Two-pass HW-tiled path, including the ragged last tile + masking.
    B2, C2, H2, W2 = 2, 8, 12, 12
    x2 = jax.random.normal(k_x2, (B2, C2, H2, W2), dtype=jnp.float32)
    bound2 = 1.0 / (C2 ** 0.5)
    w2 = jax.random.uniform(k_w, (C2, C2), jnp.float32, -bound2, bound2)
    b2 = jax.random.uniform(k_b, (C2,), jnp.float32, -bound2, bound2)

    out2 = jax.block_until_ready(channel_attention(x2, w2, b2, force_impl="two_pass"))
    ref2 = _reference(x2, w2, b2)
    assert jnp.allclose(out2, ref2, atol=1e-5, rtol=1e-5), "two-pass path mismatch vs reference"

    # 3) Fused path with the MXU matvec gate (C >= 256), still a small problem.
    B3, C3, H3, W3 = 1, 256, 8, 8
    x3 = jax.random.normal(k_x3, (B3, C3, H3, W3), dtype=jnp.float32)
    bound3 = 1.0 / (C3 ** 0.5)
    w3 = jax.random.uniform(k_w3, (C3, C3), jnp.float32, -bound3, bound3)
    b3 = jax.random.uniform(k_b3, (C3,), jnp.float32, -bound3, bound3)

    out3 = jax.block_until_ready(channel_attention(x3, w3, b3))
    ref3 = _reference(x3, w3, b3)
    assert jnp.allclose(out3, ref3, atol=1e-4, rtol=1e-4), "fused (MXU) path mismatch vs reference"

    print("KERNEL_OK")
</pallas_src>

<mosaic_0001>
module attributes {stable_mosaic.version = 11 : i64} {
  func.func @_ca_fused_kernel(%arg0: i32, %arg1: memref<1x4x256xf32, #tpu.memory_space<vmem>>, %arg2: memref<4x4xf32, #tpu.memory_space<vmem>>, %arg3: memref<4x1xf32, #tpu.memory_space<vmem>>, %arg4: memref<1x4x256xf32, #tpu.memory_space<vmem>>) attributes {dimension_semantics = [#tpu.dimension_semantics<parallel>], iteration_bounds = array<i64: 2>, scalar_prefetch = 0 : i64, scratch_operands = 0 : i64, tpu.core_type = #tpu.core_type<tc>, window_params = [{transform_indices = @transform_0, window_bounds = array<i64: 1, 4, 256>}, {pipeline_mode = #tpu.pipeline_mode<synchronous>, transform_indices = @transform_1, window_bounds = array<i64: 4, 4>}, {pipeline_mode = #tpu.pipeline_mode<synchronous>, transform_indices = @transform_2, window_bounds = array<i64: 4, 1>}, {transform_indices = @transform_3, window_bounds = array<i64: 1, 4, 256>}]} {
    %c0 = arith.constant 0 : index
    %c0_0 = arith.constant 0 : index
    %c0_1 = arith.constant 0 : index
    %0 = vector.load %arg1[%c0, %c0_0, %c0_1] : memref<1x4x256xf32, #tpu.memory_space<vmem>>, vector<1x4x256xf32>
    %1 = vector.shape_cast %0 : vector<1x4x256xf32> to vector<4x256xf32>
    %cst = arith.constant dense<0.000000e+00> : vector<4xf32>
    %2 = vector.multi_reduction <add>, %1, %cst [1] : vector<4x256xf32> to vector<4xf32>
    %3 = vector.shape_cast %2 : vector<4xf32> to vector<4x1xf32>
    %cst_2 = arith.constant 2.560000e+02 : f32
    %4 = vector.broadcast %cst_2 : f32 to vector<4x1xf32>
    %5 = arith.divf %3, %4 : vector<4x1xf32>
    %c0_3 = arith.constant 0 : index
    %c0_4 = arith.constant 0 : index
    %6 = vector.load %arg3[%c0_3, %c0_4] : memref<4x1xf32, #tpu.memory_space<vmem>>, vector<4x1xf32>
    %c0_5 = arith.constant 0 : index
    %c0_6 = arith.constant 0 : index
    %7 = vector.load %arg2[%c0_5, %c0_6] : memref<4x4xf32, #tpu.memory_space<vmem>>, vector<4x4xf32>
    %8 = tpu.transpose %5, [1, 0] : vector<4x1xf32> -> vector<1x4xf32>
    %9 = vector.broadcast %8 : vector<1x4xf32> to vector<4x4xf32>
    %10 = arith.mulf %7, %9 : vector<4x4xf32>
    %cst_7 = arith.constant dense<0.000000e+00> : vector<4xf32>
    %11 = vector.multi_reduction <add>, %10, %cst_7 [1] : vector<4x4xf32> to vector<4xf32>
    %12 = vector.shape_cast %11 : vector<4xf32> to vector<4x1xf32>
    %13 = arith.addf %12, %6 : vector<4x1xf32>
    %14 = arith.negf %13 : vector<4x1xf32>
    %15 = math.exp %14 : vector<4x1xf32>
    %cst_8 = arith.constant 1.000000e+00 : f32
    %16 = vector.broadcast %cst_8 : f32 to vector<4x1xf32>
    %17 = arith.addf %16, %15 : vector<4x1xf32>
    %18 = arith.divf %16, %17 : vector<4x1xf32>
    %19 = vector.broadcast %18 : vector<4x1xf32> to vector<4x256xf32>
    %20 = arith.mulf %1, %19 : vector<4x256xf32>
    %c0_9 = arith.constant 0 : index
    %c0_10 = arith.constant 0 : index
    %c0_11 = arith.constant 0 : index
    %21 = vector.load %arg4[%c0_9, %c0_10, %c0_11] : memref<1x4x256xf32, #tpu.memory_space<vmem>>, vector<1x4x256xf32>
    %22 = vector.shape_cast %21 : vector<1x4x256xf32> to vector<4x256xf32>
    %23 = vector.shape_cast %20 : vector<4x256xf32> to vector<1x4x256xf32>
    tpu.vector_store %arg4[%c0_9, %c0_10, %c0_11], %23 {strides = array<i32>} : memref<1x4x256xf32, #tpu.memory_space<vmem>>, vector<1x4x256xf32>,
    return
  }
  func.func @transform_0(%arg0: i32) -> (i32, i32, i32) {
    %c0_i32 = arith.constant 0 : i32
    %c0_i32_0 = arith.constant 0 : i32
    %c0_i32_1 = arith.constant 0 : i32
    return %arg0, %c0_i32, %c0_i32_0 : i32, i32, i32
  }
  func.func @transform_1(%arg0: i32) -> (i32, i32) {
    %c0_i32 = arith.constant 0 : i32
    %c0_i32_0 = arith.constant 0 : i32
    %c0_i32_1 = arith.constant 0 : i32
    return %c0_i32, %c0_i32_0 : i32, i32
  }
  func.func @transform_2(%arg0: i32) -> (i32, i32) {
    %c0_i32 = arith.constant 0 : i32
    %c0_i32_0 = arith.constant 0 : i32
    %c0_i32_1 = arith.constant 0 : i32
    return %c0_i32, %c0_i32_0 : i32, i32
  }
  func.func @transform_3(%arg0: i32) -> (i32, i32, i32) {
    %c0_i32 = arith.constant 0 : i32
    %c0_i32_0 = arith.constant 0 : i32
    %c0_i32_1 = arith.constant 0 : i32
    return %arg0, %c0_i32, %c0_i32_0 : i32, i32, i32
  }
}

</mosaic_0001>

<bundles_post_ra>
// kernel: tpu_custom_call.1
= control target key start
LH: loop header
LB: loop body
LE: loop exit
PB: predicated region body
PF: predicated region fallthrough
CT: control target
= control target key end

     0   :  { %8 = vsyncpa [#allocation3], 0  ;;  %s714_s0 = inlined_call_operand.hbm [shape: f32[2,4,256], index: 0, kind: input, shape index: {}]   ;;  %s715_s1 = inlined_call_operand.vmem [shape: f32[4,4], index: 1, kind: input, shape index: {}]   ;;  %s716_s2 = inlined_call_operand.vmem [shape: f32[4,1], index: 2, kind: input, shape index: {}]   ;;  %s717_s3 = inlined_call_operand.hbm [shape: f32[2,4,256], index: 3, kind: output, shape index: {}]  }
   0x1   :  { %10 = vsyncpa [#allocation3 + $0x1], 0 }
   0x2   :  { %11 = vsyncpa [#allocation4], 0 }
   0x3   :  { %13 = vsyncpa [#allocation4 + $0x1], 0  ;;  %s543_s12 = smov 0   ;;  %s545_s13 = smov 0  }
   0x4   :  { %s547_s14 = smov 0   ;;  %s549_s15 = smov 0  }
   0x5 LB: > { %s564_s16 = sadd.s32 4294967295, %s517_s15   ;;  %s348_s17 = sadd.s32 4294967294, %s517_s15   ;;  %s517_s15 = sphi %s549_s15, %s732_s15   ;;  %s513_s14 = sphi %s547_s14, %s731_s14   ;;  %s509_s13 = sphi %s545_s13, %s730_s13   ;;  %s505_s12 = sphi %s543_s12, %s729_s12  }
   0x6   : > { %s568_s18 = sadd.s32 1, %s517_s15   ;;  %s26_s19 = sadd.s32 1, %s513_s14 }
   0x7   : > { %s23_s20 = ssub.s32 %s517_s15, %s568_s18  ;;  %p33_p0 = scmp.ne.s32.totalorder %s513_s14, %s509_s13 }
   0x8   : > { %p24_p1 = scmp.eq.s32.totalorder %s23_s20, 0  ;;  %p34_p2 = scmp.eq.s32.totalorder %s517_s15, 0 }
   0x9   : > { %p39_p3 = scmp.ne.s32.totalorder %s509_s13, %s505_s12  ;;  %p40_p4 = scmp.eq.s32.totalorder %s564_s16, 0 }
   0xa   : > { %s580_s21 = scalar_select %p24_p1, %s513_s14, %s26_s19  }
   0xb   : > { %p582_p5 = por %p34_p2, %p33_p0  ;;  %p586_p6 = por %p40_p4, %p39_p3 }
   0xc   : > { %p105_p7 = scmp.eq.s32.totalorder %s564_s16, 1  ;;  %p111_p8 = scmp.eq.s32.totalorder %s348_s17, 1 }
   0xd   : > { %p377_p10 = scmp.lt.s32.totalorder %s517_s15, 2  ;;  %s137_s26 = sand.u32 1, %s513_s14  }
   0xe   : > { %p593_p11 = por %p105_p7, %p33_p0  ;;  %p597_p12 = por %p111_p8, %p39_p3 }
   0xf   : > { %s363_s27 = sshll.u32 %s517_s15, 7  ;;  %s351_s28 = sshll.u32 %s137_s26, 3 }
  0x10   : > { %s721_s24 = scalar_select %p593_p11, 1, 0 }
  0x11   : > { %s722_s25 = scalar_select %p597_p12, 1, 0 }
  0x12   : > { %s606_s4 = scalar_lea.hbm %s714_s0, %s363_s27  ;;  %s141_s5 = scalar_lea.vmem [#allocation2], %s351_s28 }
  0x13   : > { %s149_s6 = sshll.u32 %s141_s5, 4  ;;  %p610_p13 = pnand %p377_p10, %p582_p5  ;;  %s614_s6 = int_to_ptr.vmem [resolvable:$true] %s149_s6 }
  0x14   : > { %s138_s8 = scalar_lea.sflag [#allocation3], %s137_s26  ;;  %s421_s9 = scalar_lea.hbm %s606_s4, 128 }
  0x15   : > { %p422_p2 = scmp.ne.s32.totalorder %s606_s4, %s421_s9  ;;  %p423_p3 = pneg %p610_p13 }
  0x16   : > { %s426_s17 = scalar_lea.hbm %s714_s0, 256  ;;  %p427_p5 = scmp.lt.u32.totalorder %s606_s4, %s714_s0 }
  0x17   : > { %p424_p4 = pnand %p423_p3, %p422_p2  ;;  %p428_p8 = scmp.lt.u32.totalorder %s426_s17, %s421_s9 }
  0x18   : > { %p430_p9 = scmp.lt.u32.totalorder %s421_s9, %s606_s4 }
  0x19   : > { %p425_p7 = pneg %p424_p4  ;;  %p429_p10 = por %p428_p8, %p427_p5 }
  0x1b   : > { %p431_p0 = por %p430_p9, %p429_p10 }
  0x1d   : > { %p432_p1 = pnand %p431_p0, %p425_p7 }
  0x1f   : > { %435 = shalt.err (!%p432_p1)
}
  0x20   : > { %s436_s22 = scalar_lea.vmem %s614_s6, 128  ;;  %s519_s26 = smov [#allocation2]  }
  0x21   : > { %p437_p2 = scmp.ne.s32.totalorder %s614_s6, %s436_s22  ;;  %s441_s27 = sshll.u32 %s519_s26, 4  ;;  %s442_s27 = int_to_ptr.vmem [resolvable:$false] %s441_s27 }
  0x22   : > { %s443_s28 = scalar_lea.vmem %s442_s27, 256  ;;  %p444_p11 = scmp.lt.s32.totalorder %s614_s6, %s442_s27 }
  0x23   : > { %p439_p4 = pnand %p437_p2, %p423_p3  ;;  %p445_p5 = scmp.lt.s32.totalorder %s443_s28, %s436_s22 }
  0x25   : > { %p440_p12 = pneg %p439_p4  ;;  %p446_p8 = por %p445_p5, %p444_p11 }
  0x27   : > { %p447_p9 = pnand %p446_p8, %p440_p12 }
  0x29   : > { %450 = shalt.err (!%p447_p9)
}
  0x2a   : > { %372 = dma.hbm_to_vmem [thread:$0]  (!%p610_p13), %s606_s4, 128, %s614_s6, %s138_s8  }
  0x2b   : > { %p724_p0 = scmp.lt.s32.totalorder %s517_s15, 3  ;;  %p725_p1 = scmp.ge.s32.totalorder %s517_s15, 1 }
  0x2d   : > { %p155_p3 = pnand %p725_p1, %p724_p0 }
  0x2e   : > { %s648_s29 = sand.u32 (!%p155_p3), 1, %s509_s13  }
  0x2f   : > { %158 = sbr.rel (%p155_p3) target bundleno = 655 (0x28f), region = 32  ;;  %s355_s30 = sshll.u32 (!%p155_p3), %s648_s29, 3 }
  0x30   : > { %s161_s5 = scalar_lea.sflag (!%p155_p3), [#allocation3], %s648_s29  ;;  %s164_s7 = scalar_lea.vmem (!%p155_p3), [#allocation2], %s355_s30 }
  0x36   : > { %496 = dma.done.wait (%p586_p6), %s161_s5, 128  }
  0x37   : > { %498 = vsyncadd (%p586_p6), %s161_s5, 4294967168  ;;  %vm191_vm0 = vcmask 1043456   ;;  %v187_v0 = vld [vmem:[%s164_s7] sm:$0xff]  ;;  %v233_v7 = vlaneseq  ;;  %vm238_vm1 = vcmask 27648   ;;  %v520_v15 = vmov 0   ;;  %s364_s9 = sshll.u32 %s564_s16, 7 }
  0x38   : > { %v189_v1 = vcombine.high %v187_v0, %v187_v0  ;;  %v192_v2 = vsel %vm191_vm0, %v187_v0, 0.0  ;;  %v200_v11 = vld [vmem:[%s715_s1] sm:$0xf]  ;;  %414 = vset.pattern.permute.xlu1 %v520_v15  ;;  %v521_v23 = vmov 839922192   ;;  %s186_s10 = scalar_lea.vmem [#allocation5], %s355_s30  ;;  %s670_s20 = scalar_lea.hbm %s717_s3, %s364_s9 }
  0x39   : > { %v234_v8 = vshrl.u32 %v233_v7, 7  ;;  %v199_v16 = vld [vmem:[%s716_s2] sm:$0xf]  ;;  %v254_v24 = vunpack.c.l.s4 %v521_v23  ;;  %s278_s11 = sshll.u32 %s186_s10, 4  ;;  %s264_s22 = scalar_lea.sflag [#allocation4], %s648_s29  ;;  %s672_s11 = int_to_ptr.vmem [resolvable:$true] %s278_s11 }
  0x3a   : > { %v193_v3 = vsel %vm191_vm0, %v189_v1, 0.0  ;;  %s451_s26 = scalar_lea.vmem %s672_s11, 128  ;;  %p726_p11 = scmp.ne.s32.totalorder %s721_s24, 0 }
  0x3b   : > { %v194_v4 = vadd.f32 %v193_v3, %v192_v2  ;;  %v235_v9 = vsub.s32 0, %v234_v8  ;;  %v255_v25 = vunpack.c.0.s8 %v254_v24  ;;  %p452_p6 = scmp.ne.s32.totalorder %s672_s11, %s451_s26  ;;  %s522_s16 = smov [#allocation5]  }
  0x3c   : > { %s455_s27 = sshll.u32 %s522_s16, 4  ;;  %s456_s27 = int_to_ptr.vmem [resolvable:$false] %s455_s27 }
  0x3d   : > { %195 = vadd.xlane.f32.xlu0 %v194_v4  ;;  %v258_v26 = vsub.s32 %v255_v25, %v234_v8  ;;  %p453_p12 = pnand %p452_p6, %p726_p11  ;;  %s457_s28 = scalar_lea.vmem %s456_s27, 256 }
  0x3e   : > { %p458_p7 = scmp.lt.s32.totalorder %s672_s11, %s456_s27  ;;  %p459_p10 = scmp.lt.s32.totalorder %s457_s28, %s451_s26 }
  0x3f   : > { %p454_p13 = pneg %p453_p12 }
  0x40   : > { %p460_p2 = por %p459_p10, %p458_p7 }
  0x42   : > { %p461_p4 = pnand %p460_p2, %p454_p13 }
  0xca   : > { %v196_v5 = vpop.xlane.xlu0 %195 }
  0xcb   : > { %v198_v6 = vmul.f32 0.00390625, %v196_v5 }
  0xcd   : > { %201 = vxpose.xlu0.b32.start.end [1/1] (short) (narrow) %v198_v6, 8 }
  0xf6   : > { %415 = vset.pattern.permute.xlu0 %v520_v15 }
 0x14d   : > { %v217_v10 = vpop.trf.xlu0 }
 0x14e   : > { %v236_v12 = vrot.slane %v217_v10, %v235_v9 }
 0x150   : > { %v237_v13 = vmul.f32 %v236_v12, %v200_v11 }
 0x152   : > { %v239_v14 = vsel %vm238_vm1, %v237_v13, 0.0 }
 0x153   : > { %240 = vadd.xlane.f32.xlu1 %v239_v14 }
 0x1e0   : > { %v241_v17 = vpop.xlane.xlu1 %240 }
 0x1e1   : > { %v242_v18 = vadd.f32 %v241_v17, %v199_v16 }
 0x1e3   : > { %v357_v19 = vmul.f32 -1.442695, %v242_v18 }
 0x1e5   : > { %417 = vpow2.f32 %v357_v19 }
 0x1ef   : > { %v418_v20 = vpop.eup %417 }
 0x1f0   : > { %v246_v21 = vadd.f32 1.0, %v418_v20 }
 0x1f2   : > { %419 = vrcp.f32 %v246_v21 }
 0x1fc   : > { %v420_v22 = vpop.eup %419 }
 0x1fd   : > { %251 = vperm.xlu1 %414, %v420_v22  }
 0x27c   : > { %v252_v27 = vpop.permute.xlu1 %251 }
 0x27d   : > { %v259_v28 = vrot.slane %v252_v27, %v258_v26 }
 0x27f   : > { %v261_v29 = vmul.f32 %v259_v28, %v187_v0 }
 0x281   : > { %262 = vst [vmem:[%s186_s10] sm:$0xff] %v261_v29 }
 0x282   : > { %464 = shalt.err (!%p461_p4)
}
 0x283   : > { %s465_s29 = scalar_lea.hbm %s670_s20, 128  ;;  %s469_s7 = scalar_lea.hbm %s717_s3, 256 }
 0x284   : > { %p466_p5 = scmp.ne.s32.totalorder %s670_s20, %s465_s29  ;;  %p470_p0 = scmp.lt.u32.totalorder %s670_s20, %s717_s3 }
 0x285   : > { %p471_p1 = scmp.lt.u32.totalorder %s469_s7, %s465_s29  ;;  %p473_p6 = scmp.lt.u32.totalorder %s465_s29, %s670_s20 }
 0x286   : > { %p467_p8 = pnand %p466_p5, %p726_p11 }
 0x287   : > { %p472_p3 = por %p471_p1, %p470_p0 }
 0x288   : > { %p468_p9 = pneg %p467_p8 }
 0x289   : > { %p474_p12 = por %p473_p6, %p472_p3 }
 0x28b   : > { %p475_p13 = pnand %p474_p12, %p468_p9 }
 0x28d   : > { %478 = shalt.err (!%p475_p13)
}
 0x28e   : > { %367 = dma.vmem_to_hbm [thread:$0]  (%p726_p11), %s672_s11, 128, %s670_s20, %s264_s22  }
 0x28f PF: > { %s290_s23 = sand.u32 1, %s505_s12   ;;  %p727_p7 = scmp.ne.s32.totalorder %s722_s25, 0 }
 0x290   : > { %p728_p10 = scmp.ge.s32.totalorder %s517_s15, 2  ;;  %s291_s8 = scalar_lea.sflag [#allocation4], %s290_s23 }
 0x292   : > { %p374_p2 = pnand %p728_p10, %p727_p7 }
 0x294   : > { %500 = dma.done.wait (!%p374_p2), %s291_s8, 128  }
 0x295   : > { %502 = vsyncadd (!%p374_p2), %s291_s8, 4294967168  ;;  %p16_p4 = scmp.ge.s32.totalorder %s568_s18, 4   ;;  %s729_s12 = smov %s509_s13 }
 0x296   : > { %s730_s13 = smov %s513_s14  ;;  %s731_s14 = smov %s580_s21 }
 0x297   : > { %s732_s15 = smov %s568_s18  ;;  %18 = sbr.rel (!%p16_p4) target bundleno = 5 (0x5), region = 77 }
 0x29e   :  { %296 = vsyncpa [#allocation3], 1 }
 0x29f   :  { %298 = vsyncpa [#allocation3 + $0x1], 1 }
 0x2a0   :  { %299 = vsyncpa [#allocation4], 1 }
 0x2a1   :  { %301 = vsyncpa [#allocation4 + $0x1], 1 }

</bundles_post_ra>
